<compile_context>
chip_gen: v7x
topology: tpu7x:2x2x1
jax: 0.10.0
libtpu: 0.0.40
codegen_flags: <defaults>
</compile_context>

<pallas_src>
import math
import functools

import jax
import jax.numpy as jnp
from jax.experimental import pallas as pl
from jax.experimental.pallas import tpu as pltpu


def _dgc_kernel(f_ref, g_ref, w_ref, b_ref, o_ref, *, compute_dtype):
    # f_ref: [BT, N, Din] f32       (BT batch elements per grid step)
    # g_ref: [BT, N, N]   int8/int32 edge labels
    # w_ref: [2, Din, Dp] f32       (w_ref[0] = W_last, w_ref[1] = W_sum)
    # b_ref: [L, Dp]      f32       (label bias, lane-padded)
    # o_ref: [BT, N, Dp]  f32
    BT, N, Din = f_ref.shape
    L, Dp = b_ref.shape

    feat = f_ref[...]                                   # [BT, N, Din] f32
    g = g_ref[...].astype(jnp.int32)                    # [BT, N, N]

    feat_c = feat.astype(compute_dtype)
    adj = (g != 0).astype(compute_dtype)                # [BT, N, N] (0/1 exact)
    w_last = w_ref[0].astype(compute_dtype)             # [Din, Dp]
    w_sum = w_ref[1].astype(compute_dtype)              # [Din, Dp]

    # Weight matmul on the flattened batch: M = BT*N rows through the MXU.
    feat2d = feat_c.reshape(BT * N, Din)
    out = jnp.dot(feat2d, w_last, preferred_element_type=jnp.float32)

    # Single adjacency matmul (per batch element), then one weight matmul.
    af = jnp.einsum("bnm,bmi->bni", adj, feat_c,
                    preferred_element_type=jnp.float32)          # [BT, N, Din]
    af2d = af.reshape(BT * N, Din).astype(compute_dtype)
    out = out + jnp.dot(af2d, w_sum, preferred_element_type=jnp.float32)

    # bias[graph].sum(2) == counts @ bias  (exact: counts are integer-valued).
    labels = jax.lax.broadcasted_iota(jnp.int32, (BT, N, N, L), 3)
    onehot = (g[..., None] == labels).astype(jnp.float32)        # [BT, N, N, L]
    counts = jnp.sum(onehot, axis=2)                             # [BT, N, L]
    out = out + jnp.dot(counts.reshape(BT * N, L), b_ref[...],
                        preferred_element_type=jnp.float32)

    o_ref[...] = out.reshape(BT, N, Dp).astype(o_ref.dtype)


def directed_graph_conv(feature, graph, weights, bias, *, dir_num, num_labels,
                        compute_dtype=jnp.bfloat16):
    """feature: [B, N, Din] f32, graph: [B, N, N] int edge labels in
    [0, num_labels), weights: [dir_num, Din, Dout] f32 (pre-transposed so the
    kernel computes feature @ W), bias: [num_labels, Dout] f32.
    Returns [B, N, Dout] f32."""
    B, N, Din = feature.shape
    Dout = weights.shape[-1]
    assert bias.shape == (num_labels, Dout)

    # Lane-dense output: pad Dout to a multiple of 128 (sliced off after call).
    Dp = ((Dout + 127) // 128) * 128

    # Collapse the direction loop (batch independent, done once in the wrapper).
    w_last = weights[dir_num - 1]
    w_sum = jnp.sum(weights[: dir_num - 1], axis=0)
    w2 = jnp.stack([w_last, w_sum], axis=0)                      # [2, Din, Dout]
    w2 = jnp.pad(w2, ((0, 0), (0, 0), (0, Dp - Dout)))
    bias_p = jnp.pad(bias, ((0, 0), (0, Dp - Dout)))

    # NOTE: labels must lie in [0, num_labels); out-of-range labels would be
    # dropped here (PyTorch's bias[graph] would index out of bounds anyway).
    graph_k = graph.astype(jnp.int8 if num_labels <= 127 else jnp.int32)

    # Batch tile: pack enough batch elements per grid step so M = BT*N
    # approaches a full MXU pass; BT must divide B.
    target = max(1, pl.cdiv(128, N))
    BT = 1
    for d in range(1, B + 1):
        if B % d == 0 and d <= target:
            BT = d

    kernel = functools.partial(_dgc_kernel, compute_dtype=compute_dtype)

    out = pl.pallas_call(
        kernel,
        out_shape=jax.ShapeDtypeStruct((B, N, Dp), jnp.float32),
        grid_spec=pltpu.PrefetchScalarGridSpec(
            num_scalar_prefetch=0,
            grid=(B // BT,),
            in_specs=[
                # per-step batch tiles; trailing dims span the full arrays.
                pl.BlockSpec((BT, N, Din), lambda b: (b, 0, 0)),
                pl.BlockSpec((BT, N, N), lambda b: (b, 0, 0)),
                # constant operands: same block every grid step.
                pl.BlockSpec((2, Din, Dp), lambda b: (0, 0, 0)),
                pl.BlockSpec((num_labels, Dp), lambda b: (0, 0)),
            ],
            out_specs=pl.BlockSpec((BT, N, Dp), lambda b: (b, 0, 0)),
        ),
        compiler_params=pltpu.CompilerParams(
            dimension_semantics=("parallel",)),
    )(feature, graph_k, w2, bias_p)

    return out[..., :Dout]


def reference(feature, graph, weights, bias, *, dir_num):
    # Pure-JAX f32 reference matching the PyTorch module literally.
    adj = (graph != 0).astype(jnp.float32)
    out = jnp.einsum("bni,io->bno", feature, weights[dir_num - 1])
    for i in range(dir_num - 1):
        out = out + jnp.einsum("bnm,bmo->bno", adj,
                               jnp.einsum("bni,io->bno", feature, weights[i]))
    out = out + bias[graph].sum(axis=2)
    return out


if __name__ == "__main__":
    B, N = 2, 16            # batch, num_objs
    in_dim, out_dim = 32, 32
    num_labels = 8
    dir_num = 3

    key = jax.random.PRNGKey(0)
    k_feat, k_graph, k_w, k_b = jax.random.split(key, 4)

    feature = jax.random.normal(k_feat, (B, N, in_dim), dtype=jnp.float32)
    # integer edge labels in [0, num_labels); label 0 == "no edge" for adj.
    graph = jax.random.randint(k_graph, (B, N, N), 0, num_labels,
                               dtype=jnp.int32)

    # Linear(in_dim, out_dim, bias=False) weights, stored pre-transposed
    # as [dir_num, in_dim, out_dim]; deterministic init (kaiming-uniform-like).
    w_bound = 1.0 / math.sqrt(in_dim)
    weights = jax.random.uniform(k_w, (dir_num, in_dim, out_dim),
                                 minval=-w_bound, maxval=w_bound,
                                 dtype=jnp.float32)

    # bias Parameter [num_labels, out_dim] ~ U(-stdv, stdv), stdv = 1/sqrt(out_dim)
    stdv = 1.0 / math.sqrt(out_dim)
    bias = jax.random.uniform(k_b, (num_labels, out_dim),
                              minval=-stdv, maxval=stdv, dtype=jnp.float32)

    out = directed_graph_conv(feature, graph, weights, bias,
                              dir_num=dir_num, num_labels=num_labels)
    out = jax.block_until_ready(out)

    ref = reference(feature, graph, weights, bias, dir_num=dir_num)
    assert out.shape == (B, N, out_dim)
    # Tolerance accounts for bf16 MXU inputs (f32 accumulation) and the
    # algebraic W_sum reassociation; the bias term is computed exactly.
    assert jnp.allclose(out, ref, atol=1e-1, rtol=5e-2), "mismatch vs reference"

    print("KERNEL_OK")
</pallas_src>

<mosaic_0001>
module attributes {stable_mosaic.version = 11 : i64} {
  func.func @_dgc_kernel(%arg0: i32, %arg1: memref<2x16x32xf32, #tpu.memory_space<vmem>>, %arg2: memref<2x16x16xi8, #tpu.memory_space<vmem>>, %arg3: memref<2x32x128xf32, #tpu.memory_space<vmem>>, %arg4: memref<8x128xf32, #tpu.memory_space<vmem>>, %arg5: memref<2x16x128xf32, #tpu.memory_space<vmem>>) attributes {dimension_semantics = [#tpu.dimension_semantics<parallel>], iteration_bounds = array<i64: 1>, scalar_prefetch = 0 : i64, scratch_operands = 0 : i64, tpu.core_type = #tpu.core_type<tc>, window_params = [{transform_indices = @transform_0, window_bounds = array<i64: 2, 16, 32>}, {transform_indices = @transform_1, window_bounds = array<i64: 2, 16, 16>}, {pipeline_mode = #tpu.pipeline_mode<synchronous>, transform_indices = @transform_2, window_bounds = array<i64: 2, 32, 128>}, {pipeline_mode = #tpu.pipeline_mode<synchronous>, transform_indices = @transform_3, window_bounds = array<i64: 8, 128>}, {transform_indices = @transform_4, window_bounds = array<i64: 2, 16, 128>}]} {
    %c0 = arith.constant 0 : index
    %c0_0 = arith.constant 0 : index
    %c0_1 = arith.constant 0 : index
    %0 = vector.load %arg1[%c0, %c0_0, %c0_1] : memref<2x16x32xf32, #tpu.memory_space<vmem>>, vector<2x16x32xf32>
    %c0_2 = arith.constant 0 : index
    %c0_3 = arith.constant 0 : index
    %c0_4 = arith.constant 0 : index
    %1 = vector.load %arg2[%c0_2, %c0_3, %c0_4] : memref<2x16x16xi8, #tpu.memory_space<vmem>>, vector<2x16x16xi8>
    %2 = arith.extsi %1 : vector<2x16x16xi8> to vector<2x16x16xi32>
    %3 = arith.truncf %0 : vector<2x16x32xf32> to vector<2x16x32xbf16>
    %c0_i32 = arith.constant 0 : i32
    %4 = vector.broadcast %c0_i32 : i32 to vector<2x16x16xi32>
    %5 = arith.cmpi ne, %2, %4 : vector<2x16x16xi32>
    %6 = arith.extui %5 : vector<2x16x16xi1> to vector<2x16x16xi32>
    %7 = arith.sitofp %6 : vector<2x16x16xi32> to vector<2x16x16xf32>
    %8 = arith.truncf %7 : vector<2x16x16xf32> to vector<2x16x16xbf16>
    %c0_5 = arith.constant 0 : index
    %c0_6 = arith.constant 0 : index
    %c0_7 = arith.constant 0 : index
    %9 = vector.load %arg3[%c0_5, %c0_6, %c0_7] : memref<2x32x128xf32, #tpu.memory_space<vmem>>, vector<1x32x128xf32>
    %10 = vector.shape_cast %9 : vector<1x32x128xf32> to vector<32x128xf32>
    %11 = arith.truncf %10 : vector<32x128xf32> to vector<32x128xbf16>
    %c1 = arith.constant 1 : index
    %c0_8 = arith.constant 0 : index
    %c0_9 = arith.constant 0 : index
    %12 = vector.load %arg3[%c1, %c0_8, %c0_9] : memref<2x32x128xf32, #tpu.memory_space<vmem>>, vector<1x32x128xf32>
    %13 = vector.shape_cast %12 : vector<1x32x128xf32> to vector<32x128xf32>
    %14 = arith.truncf %13 : vector<32x128xf32> to vector<32x128xbf16>
    %15 = vector.shape_cast %3 : vector<2x16x32xbf16> to vector<32x32xbf16>
    %cst = arith.constant dense<0.000000e+00> : vector<32x128xf32>
    %16 = tpu.matmul %15, %11, %cst {dimension_numbers = #tpu.dot_dimension_numbers<[1], [0], [0], [1], [0, 0, 1, 1], [], []>} : vector<32x32xbf16>, vector<32x128xbf16>, vector<32x128xf32> -> vector<32x128xf32>
    "tpu.trace_start"() <{level = 10 : i32, message = "bnm,bmi->bni"}> : () -> ()
    %cst_10 = arith.constant dense<0.000000e+00> : vector<2x16x32xf32>
    %17 = tpu.matmul %8, %3, %cst_10 {dimension_numbers = #tpu.dot_dimension_numbers<[2], [1], [1], [2], [0, 0, 0, 1, 1, 2], [0], [0]>} : vector<2x16x16xbf16>, vector<2x16x32xbf16>, vector<2x16x32xf32> -> vector<2x16x32xf32>
    "tpu.trace_stop"() : () -> ()
    %18 = vector.shape_cast %17 : vector<2x16x32xf32> to vector<32x32xf32>
    %19 = arith.truncf %18 : vector<32x32xf32> to vector<32x32xbf16>
    %cst_11 = arith.constant dense<0.000000e+00> : vector<32x128xf32>
    %20 = tpu.matmul %19, %14, %cst_11 {dimension_numbers = #tpu.dot_dimension_numbers<[1], [0], [0], [1], [0, 0, 1, 1], [], []>} : vector<32x32xbf16>, vector<32x128xbf16>, vector<32x128xf32> -> vector<32x128xf32>
    %21 = arith.addf %16, %20 : vector<32x128xf32>
    %22 = tpu.iota {dimensions = array<i32: 3>} : vector<2x16x16x8xi32>
    %23 = vector.shape_cast %2 : vector<2x16x16xi32> to vector<2x16x16x1xi32>
    %24 = vector.broadcast %23 : vector<2x16x16x1xi32> to vector<2x16x16x8xi32>
    %25 = arith.cmpi eq, %24, %22 : vector<2x16x16x8xi32>
    %26 = arith.extui %25 : vector<2x16x16x8xi1> to vector<2x16x16x8xi32>
    %27 = arith.sitofp %26 : vector<2x16x16x8xi32> to vector<2x16x16x8xf32>
    %cst_12 = arith.constant dense<0.000000e+00> : vector<2x16x8xf32>
    %28 = vector.multi_reduction <add>, %27, %cst_12 [2] : vector<2x16x16x8xf32> to vector<2x16x8xf32>
    %29 = vector.shape_cast %28 : vector<2x16x8xf32> to vector<32x8xf32>
    %c0_13 = arith.constant 0 : index
    %c0_14 = arith.constant 0 : index
    %30 = vector.load %arg4[%c0_13, %c0_14] : memref<8x128xf32, #tpu.memory_space<vmem>>, vector<8x128xf32>
    %cst_15 = arith.constant dense<0.000000e+00> : vector<32x128xf32>
    %31 = tpu.matmul %29, %30, %cst_15 {dimension_numbers = #tpu.dot_dimension_numbers<[1], [0], [0], [1], [0, 0, 1, 1], [], []>} : vector<32x8xf32>, vector<8x128xf32>, vector<32x128xf32> -> vector<32x128xf32>
    %32 = arith.addf %21, %31 : vector<32x128xf32>
    %33 = vector.shape_cast %32 : vector<32x128xf32> to vector<2x16x128xf32>
    %c0_16 = arith.constant 0 : index
    %c0_17 = arith.constant 0 : index
    %c0_18 = arith.constant 0 : index
    %34 = vector.load %arg5[%c0_16, %c0_17, %c0_18] : memref<2x16x128xf32, #tpu.memory_space<vmem>>, vector<2x16x128xf32>
    tpu.vector_store %arg5[%c0_16, %c0_17, %c0_18], %33 {strides = array<i32>} : memref<2x16x128xf32, #tpu.memory_space<vmem>>, vector<2x16x128xf32>,
    return
  }
  func.func @transform_0(%arg0: i32) -> (i32, i32, i32) {
    %c0_i32 = arith.constant 0 : i32
    %c0_i32_0 = arith.constant 0 : i32
    %c0_i32_1 = arith.constant 0 : i32
    return %arg0, %c0_i32, %c0_i32_0 : i32, i32, i32
  }
  func.func @transform_1(%arg0: i32) -> (i32, i32, i32) {
    %c0_i32 = arith.constant 0 : i32
    %c0_i32_0 = arith.constant 0 : i32
    %c0_i32_1 = arith.constant 0 : i32
    return %arg0, %c0_i32, %c0_i32_0 : i32, i32, i32
  }
  func.func @transform_2(%arg0: i32) -> (i32, i32, i32) {
    %c0_i32 = arith.constant 0 : i32
    %c0_i32_0 = arith.constant 0 : i32
    %c0_i32_1 = arith.constant 0 : i32
    %c0_i32_2 = arith.constant 0 : i32
    return %c0_i32, %c0_i32_0, %c0_i32_1 : i32, i32, i32
  }
  func.func @transform_3(%arg0: i32) -> (i32, i32) {
    %c0_i32 = arith.constant 0 : i32
    %c0_i32_0 = arith.constant 0 : i32
    %c0_i32_1 = arith.constant 0 : i32
    return %c0_i32, %c0_i32_0 : i32, i32
  }
  func.func @transform_4(%arg0: i32) -> (i32, i32, i32) {
    %c0_i32 = arith.constant 0 : i32
    %c0_i32_0 = arith.constant 0 : i32
    %c0_i32_1 = arith.constant 0 : i32
    return %arg0, %c0_i32, %c0_i32_0 : i32, i32, i32
  }
}

</mosaic_0001>

<bundles_post_ra>
// kernel: tpu_custom_call.1
= control target key start
LH: loop header
LB: loop body
LE: loop exit
PB: predicated region body
PF: predicated region fallthrough
CT: control target
= control target key end

     0   :  { %9 = vsyncpa [#allocation3], 0  ;;  %s2072_s0 = inlined_call_operand.hbm [shape: f32[2,16,32], index: 0, kind: input, shape index: {}]   ;;  %s2073_s1 = inlined_call_operand.hbm [shape: s8[2,16,16], index: 1, kind: input, shape index: {}]   ;;  %s2074_s2 = inlined_call_operand.hbm [shape: f32[2,32,128], index: 2, kind: input, shape index: {}]   ;;  %s2075_s3 = inlined_call_operand.vmem [shape: f32[8,128], index: 3, kind: input, shape index: {}]   ;;  %s2076_s4 = inlined_call_operand.hbm [shape: f32[2,16,128], index: 4, kind: output, shape index: {}]  }
   0x1   :  { %10 = vsyncpa [#allocation6], 0 }
   0x2   :  { %11 = vsyncpa [#allocation4], 0  ;;  %s1573_s15 = smov [#allocation5]   ;;  %s1479_s19 = scalar_lea.hbm %s2073_s1, 128 }
   0x3   :  { %s29_s16 = sshll.u32 %s1573_s15, 4  ;;  %p1480_p0 = scmp.ne.s32.totalorder %s2073_s1, %s1479_s19  ;;  %s30_s16 = int_to_ptr.vmem [resolvable:$true] %s29_s16 }
   0x4   :  { %p1483_p1 = scmp.lt.u32.totalorder %s1479_s19, %s2073_s1 }
   0x6   :  { %p1485_p2 = pnand %p1483_p1, %p1480_p0 }
   0x8   :  { %1488 = shalt.err (!%p1485_p2)
}
   0x9   :  { %s1489_s24 = scalar_lea.vmem %s30_s16, 128  ;;  %p1494_p4 = scmp.lt.s32.totalorder %s30_s16, %s30_s16 }
   0xa   :  { %p1490_p3 = scmp.ne.s32.totalorder %s30_s16, %s1489_s24  ;;  %p1495_p5 = scmp.lt.s32.totalorder %s1489_s24, %s1489_s24 }
   0xc   :  { %p1496_p6 = por %p1495_p5, %p1494_p4 }
   0xe   :  { %p1497_p7 = pnand %p1496_p6, %p1490_p3 }
  0x10   :  { %1500 = shalt.err (!%p1497_p7)
}
  0x11   :  { %s1574_s25 = smov 32   ;;  %s1575_s26 = smov 2  }
  0x12   :  { %35 = dma.hbm_to_vmem [thread:$0]  %s2073_s1, 128, %s30_s16, [#allocation6], %s1574_s25, %s1574_s25, %s1575_s26  }
  0x13   :  { %s1576_s29 = smov [#allocation2]   ;;  %s1501_s7 = scalar_lea.hbm %s2072_s0, 512 }
  0x14   :  { %s17_s30 = sshll.u32 %s1576_s29, 4  ;;  %p1502_p8 = scmp.ne.s32.totalorder %s2072_s0, %s1501_s7  ;;  %s18_s30 = int_to_ptr.vmem [resolvable:$true] %s17_s30 }
  0x15   :  { %p1505_p9 = scmp.lt.u32.totalorder %s1501_s7, %s2072_s0 }
  0x17   :  { %p1507_p10 = pnand %p1505_p9, %p1502_p8 }
  0x19   :  { %1510 = shalt.err (!%p1507_p10)
}
  0x1a   :  { %s1511_s12 = scalar_lea.vmem %s18_s30, 512  ;;  %p1516_p12 = scmp.lt.s32.totalorder %s18_s30, %s18_s30 }
  0x1b   :  { %p1512_p11 = scmp.ne.s32.totalorder %s18_s30, %s1511_s12  ;;  %p1517_p13 = scmp.lt.s32.totalorder %s1511_s12, %s1511_s12 }
  0x1d   :  { %p1518_p0 = por %p1517_p13, %p1516_p12 }
  0x1f   :  { %p1519_p1 = pnand %p1518_p0, %p1512_p11 }
  0x21   :  { %1522 = shalt.err (!%p1519_p1)
}
  0x22   :  { %s1577_s1 = smov 128   ;;  %s1578_s13 = smov 8  }
  0x23   :  { %23 = dma.hbm_to_vmem [thread:$0]  %s2072_s0, 512, %s18_s30, [#allocation3], %s1577_s1, %s1577_s1, %s1578_s13  }
  0x24   :  { %s1579_s16 = smov [#allocation7]   ;;  %s1523_s20 = scalar_lea.hbm %s2074_s2, 1024 }
  0x25   :  { %s41_s17 = sshll.u32 %s1579_s16, 4  ;;  %p1524_p2 = scmp.ne.s32.totalorder %s2074_s2, %s1523_s20  ;;  %s42_s17 = int_to_ptr.vmem [resolvable:$true] %s41_s17 }
  0x26   :  { %p1527_p3 = scmp.lt.u32.totalorder %s1523_s20, %s2074_s2 }
  0x28   :  { %p1529_p4 = pnand %p1527_p3, %p1524_p2 }
  0x2a   :  { %1532 = shalt.err (!%p1529_p4)
}
  0x2b   :  { %s1533_s25 = scalar_lea.vmem %s42_s17, 1024  ;;  %p1538_p6 = scmp.lt.s32.totalorder %s42_s17, %s42_s17 }
  0x2c   :  { %p1534_p5 = scmp.ne.s32.totalorder %s42_s17, %s1533_s25  ;;  %p1539_p7 = scmp.lt.s32.totalorder %s1533_s25, %s1533_s25 }
  0x2e   :  { %p1540_p8 = por %p1539_p7, %p1538_p6 }
  0x30   :  { %p1541_p9 = pnand %p1540_p8, %p1534_p5 }
  0x32   :  { %1544 = shalt.err (!%p1541_p9)
}
  0x33   :  { %47 = dma.hbm_to_vmem [thread:$0]  %s2074_s2, 1024, %s42_s17, [#allocation6], %s1577_s1, %s1577_s1, %s1578_s13  }
  0x34   :  { %1567 = dma.done.wait [#allocation3], 512  }
  0x35   :  { %1568 = vsyncadd [#allocation3], 4294966784 }
  0x36   :  { %1569 = dma.done.wait [#allocation6], 1152  }
  0x37   :  { %1570 = vsyncadd [#allocation6], 4294966144  ;;  %v303_v0 = vlaneseq  ;;  %v1580_v1 = vmov 0.0   ;;  %vm1581_vm0 = vmmov 0   ;;  %v60_v5 = vld [vmem:[#allocation2] sm:$0xff]  ;;  %v61_v6 = vld [vmem:[#allocation2 + $0x8] sm:$0xff] }
  0x38   :  { %1428 = vmatprep.subr.bf16.mxu0 %v1580_v1  ;;  %1434 = vmatprep.subr.bf16.mxu1 %v1580_v1  ;;  %v1404_v7 = vld [vmem:[#allocation5] sm:$0xff]   ;;  %v1659_v8 = vpack.c.bf16 %v61_v6, %v60_v5  ;;  %v62_v11 = vld [vmem:[#allocation2 + $0x10] sm:$0xff]  ;;  %v63_v12 = vld [vmem:[#allocation2 + $0x18] sm:$0xff]  ;;  %vm101_vm1 = vcmask 130048   ;;  %vm849_vm8 = vcmask 64512   ;;  %vm1171_vm15 = vcmask 1041409  }
  0x39   :  { %v306_v2 = vshrl.u32 %v303_v0, 7  ;;  %1430 = vmatprep.mubr.msk.bf16.mxu0 %vm1581_vm0, %v1580_v1  ;;  %1436 = vmatprep.mubr.msk.bf16.mxu1 %vm1581_vm0, %v1580_v1  ;;  %v1661_v9 = vunpack.c.0.s8 %v1404_v7  ;;  %v1663_v10 = vunpack.c.1.s8 %v1404_v7  ;;  %v1665_v13 = vunpack.c.2.s8 %v1404_v7  ;;  %v95_v59 = vld [vmem:[#allocation7 + $0x20] sm:$0xff]  ;;  %v96_v60 = vld [vmem:[#allocation7 + $0x28] sm:$0xff]  ;;  %v97_v62 = vld [vmem:[#allocation7 + $0x30] sm:$0xff] }
  0x3a   :  { %v1667_v14 = vpack.c.bf16 %v63_v12, %v62_v11  ;;  %v1410_v15 = vunpack.c.3.s8 %v1404_v7  ;;  %1429 = vmatpush3.bf16.msra.mxu0 %v1659_v8  ;;  %v99_v61 = vpack.c.bf16 %v96_v60, %v95_v59  ;;  %v98_v63 = vld [vmem:[#allocation7 + $0x38] sm:$0xff]  ;;  %v89_v5 = vld [vmem:[#allocation7 + $0x8] sm:$0xff] }
  0x3b   :  { %v1655_v3 = vsub.s32 1, %v306_v2  ;;  %v1657_v4 = vsub.s32 0, %v306_v2  ;;  %vm74_vm2 = vcmp.ne.s32.totalorder %v1661_v9, 0  ;;  %vm75_vm3 = vcmp.ne.s32.totalorder %v1663_v10, 0 }
  0x3c   :  { %1435 = vmatpush3.bf16.msra.mxu1 %v1667_v14  ;;  %v1325_v18 = vsel %vm74_vm2, 1.0, %v1580_v1  ;;  %v1326_v19 = vsel %vm75_vm3, 1.0, %v1580_v1  ;;  %vm76_vm4 = vcmp.ne.s32.totalorder %v1665_v13, 0  ;;  %vm77_vm5 = vcmp.ne.s32.totalorder %v1410_v15, 0  ;;  %1440 = vmatprep.subr.bf16.mxu0 %v99_v61 }
  0x3d   :  { %v319_v16 = vrot.slane %v1661_v9, %v1655_v3  ;;  %v308_v17 = vrot.slane %v1661_v9, %v1657_v4  ;;  %v86_v20 = vpack.c.bf16 %v1326_v19, %v1325_v18  ;;  %v1327_v21 = vsel %vm76_vm4, 1.0, %v1580_v1 }
  0x3e   :  { %v1328_v22 = vsel %vm77_vm5, 1.0, %v1580_v1  ;;  %v1682_v23 = vsub.s32 2, %v306_v2  ;;  %v384_v25 = vsub.s32 7, %v306_v2  ;;  %v1688_v27 = vsub.s32 3, %v306_v2 }
  0x3f   :  { %321 = vbcast.lane.b32.xlu1 %v319_v16, 256  ;;  %310 = vbcast.lane.b32.xlu0 %v308_v17, 256  ;;  %v87_v24 = vpack.c.bf16 %v1328_v22, %v1327_v21  ;;  %v351_v28 = vsub.s32 4, %v306_v2  ;;  %v572_v29 = vrot.slane %v1410_v15, %v1657_v4  ;;  %v362_v30 = vsub.s32 5, %v306_v2 }
  0x40   :  { %1431 = vmatmul.mubr.msk.bf16.vlgmr.msra.gmra.mrb[0].mxu0 %vm101_vm1, %v86_v20  ;;  %v330_v26 = vrot.slane %v1661_v9, %v1682_v23  ;;  %v1691_v31 = vsub.s32 6, %v306_v2  ;;  %v583_v32 = vrot.slane %v1410_v15, %v1655_v3  ;;  %v385_v33 = vrot.slane %v1661_v9, %v384_v25 }
  0x41   :  { %1437 = vmatmul.mubr.msk.bf16.vlgmr.msra.gmra.mrb[0].mxu1 %vm101_vm1, %v87_v24  ;;  %v1696_v34 = vrot.slane %v1410_v15, %v1682_v23  ;;  %v1699_v35 = vrot.slane %v1663_v10, %v384_v25  ;;  %v1702_v36 = vrot.slane %v1665_v13, %v351_v28  ;;  %v1705_v37 = vrot.slane %v1410_v15, %v1688_v27 }
  0x42   :  { %v1708_v38 = vrot.slane %v1665_v13, %v362_v30  ;;  %v1710_v39 = vrot.slane %v1410_v15, %v351_v28  ;;  %v1712_v40 = vrot.slane %v1410_v15, %v362_v30  ;;  %v396_v41 = vrot.slane %v1663_v10, %v1657_v4  ;;  %1441 = vmatpush3.bf16.msra.mxu0 %v99_v61 }
  0x43   :  { %325 = vbcast.lane.b32.xlu1 %v319_v16, 264  ;;  %314 = vbcast.lane.b32.xlu0 %v308_v17, 264  ;;  %v1717_v42 = vrot.slane %v1665_v13, %v384_v25  ;;  %v1720_v43 = vrot.slane %v1410_v15, %v1691_v31  ;;  %v1722_v44 = vrot.slane %v1410_v15, %v384_v25  ;;  %vm1173_vm2 = vcmask 1042434  }
  0x44   :  { %v407_v45 = vrot.slane %v1663_v10, %v1655_v3  ;;  %v341_v46 = vrot.slane %v1661_v9, %v1688_v27  ;;  %v418_v47 = vrot.slane %v1663_v10, %v1682_v23  ;;  %v352_v48 = vrot.slane %v1661_v9, %v351_v28 }
  0x45   :  { %v429_v49 = vrot.slane %v1663_v10, %v1688_v27  ;;  %v363_v50 = vrot.slane %v1661_v9, %v362_v30  ;;  %v440_v51 = vrot.slane %v1663_v10, %v351_v28  ;;  %v484_v52 = vrot.slane %v1665_v13, %v1657_v4  ;;  %v88_v4 = vld [vmem:[#allocation7] sm:$0xff] }
  0x46   :  { %v495_v53 = vrot.slane %v1665_v13, %v1655_v3  ;;  %v374_v54 = vrot.slane %v1661_v9, %v1691_v31  ;;  %v451_v55 = vrot.slane %v1663_v10, %v362_v30  ;;  %v506_v56 = vrot.slane %v1665_v13, %v1682_v23  ;;  %v1138_v3 = vld [vmem:[%s2075_s3] sm:$0xff]  ;;  %s1582_s3 = smov [#allocation8]  }
  0x47   :  { %336 = vbcast.lane.b32.xlu1 %v330_v26, 264  ;;  %332 = vbcast.lane.b32.xlu0 %v330_v26, 256  ;;  %v462_v57 = vrot.slane %v1663_v10, %v1691_v31  ;;  %v517_v58 = vrot.slane %v1665_v13, %v1688_v27  ;;  %v100_v2 = vpack.c.bf16 %v98_v63, %v97_v62  ;;  %v1769_v9 = vand.u32 127, %v303_v0  ;;  %s1312_s28 = sshll.u32 %s1582_s3, 4  ;;  %s1313_s28 = int_to_ptr.vmem [resolvable:$true] %s1312_s28 }
  0x48   :  { %1456 = vmatprep.subr.mxu1 %v1138_v3  ;;  %v1757_v6 = vpack.c.bf16 %v89_v5, %v88_v4  ;;  %v550_v7 = vrot.slane %v1665_v13, %v1691_v31  ;;  %s1545_s29 = scalar_lea.vmem %s1313_s28, 512  ;;  %p1550_p11 = scmp.lt.s32.totalorder %s1313_s28, %s1313_s28 }
  0x49   :  { %1442 = vmatprep.subr.bf16.mxu0 %v100_v2  ;;  %1457 = vmatpush3.msra.mxu1 %v1138_v3  ;;  %p1546_p10 = scmp.ne.s32.totalorder %s1313_s28, %s1545_s29  ;;  %p1551_p12 = scmp.lt.s32.totalorder %s1545_s29, %s1545_s29 }
  0x4a   :  { %1443 = vmatpush3.bf16.msra.mxu0 %v100_v2 }
  0x4b   :  { %402 = vbcast.lane.b32.xlu1 %v396_v41, 264  ;;  %398 = vbcast.lane.b32.xlu0 %v396_v41, 256  ;;  %p1552_p13 = por %p1551_p12, %p1550_p11 }
  0x4c   :  { %1448 = vmatprep.subr.bf16.mxu0 %v1757_v6 }
  0x4d   :  { %p1553_p0 = pnand %p1552_p13, %p1546_p10 }
  0x4f   :  { %413 = vbcast.lane.b32.xlu1 %v407_v45, 264  ;;  %409 = vbcast.lane.b32.xlu0 %v407_v45, 256 }
  0x53   :  { %347 = vbcast.lane.b32.xlu1 %v341_v46, 264  ;;  %343 = vbcast.lane.b32.xlu0 %v341_v46, 256 }
  0x57   :  { %424 = vbcast.lane.b32.xlu1 %v418_v47, 264  ;;  %420 = vbcast.lane.b32.xlu0 %v418_v47, 256 }
  0x5b   :  { %358 = vbcast.lane.b32.xlu1 %v352_v48, 264  ;;  %354 = vbcast.lane.b32.xlu0 %v352_v48, 256 }
  0x5f   :  { %435 = vbcast.lane.b32.xlu1 %v429_v49, 264  ;;  %431 = vbcast.lane.b32.xlu0 %v429_v49, 256 }
  0x63   :  { %369 = vbcast.lane.b32.xlu1 %v363_v50, 264  ;;  %365 = vbcast.lane.b32.xlu0 %v363_v50, 256 }
  0x67   :  { %446 = vbcast.lane.b32.xlu1 %v440_v51, 264  ;;  %442 = vbcast.lane.b32.xlu0 %v440_v51, 256 }
  0x6b   :  { %490 = vbcast.lane.b32.xlu1 %v484_v52, 264  ;;  %486 = vbcast.lane.b32.xlu0 %v484_v52, 256 }
  0x6f   :  { %501 = vbcast.lane.b32.xlu1 %v495_v53, 264  ;;  %497 = vbcast.lane.b32.xlu0 %v495_v53, 256 }
  0x73   :  { %380 = vbcast.lane.b32.xlu1 %v374_v54, 264  ;;  %376 = vbcast.lane.b32.xlu0 %v374_v54, 256 }
  0x77   :  { %457 = vbcast.lane.b32.xlu1 %v451_v55, 264  ;;  %453 = vbcast.lane.b32.xlu0 %v451_v55, 256 }
  0x7b   :  { %512 = vbcast.lane.b32.xlu1 %v506_v56, 264  ;;  %508 = vbcast.lane.b32.xlu0 %v506_v56, 256 }
  0x7f   :  { %578 = vbcast.lane.b32.xlu1 %v572_v29, 264  ;;  %574 = vbcast.lane.b32.xlu0 %v572_v29, 256 }
  0x83   :  { %589 = vbcast.lane.b32.xlu1 %v583_v32, 264  ;;  %585 = vbcast.lane.b32.xlu0 %v583_v32, 256 }
  0x87   :  { %391 = vbcast.lane.b32.xlu1 %v385_v33, 264  ;;  %387 = vbcast.lane.b32.xlu0 %v385_v33, 256 }
  0x8b   :  { %468 = vbcast.lane.b32.xlu1 %v462_v57, 264  ;;  %464 = vbcast.lane.b32.xlu0 %v462_v57, 256 }
  0x8f   :  { %523 = vbcast.lane.b32.xlu1 %v517_v58, 264  ;;  %519 = vbcast.lane.b32.xlu0 %v517_v58, 256 }
  0x93   :  { %600 = vbcast.lane.b32.xlu1 %v1696_v34, 264  ;;  %596 = vbcast.lane.b32.xlu0 %v1696_v34, 256 }
  0x97   :  { %479 = vbcast.lane.b32.xlu1 %v1699_v35, 264  ;;  %475 = vbcast.lane.b32.xlu0 %v1699_v35, 256 }
  0x9b   :  { %534 = vbcast.lane.b32.xlu1 %v1702_v36, 264  ;;  %530 = vbcast.lane.b32.xlu0 %v1702_v36, 256 }
  0x9f   :  { %611 = vbcast.lane.b32.xlu1 %v1705_v37, 264  ;;  %607 = vbcast.lane.b32.xlu0 %v1705_v37, 256 }
  0xa3   :  { %545 = vbcast.lane.b32.xlu1 %v1708_v38, 264  ;;  %541 = vbcast.lane.b32.xlu0 %v1708_v38, 256 }
  0xa7   :  { %622 = vbcast.lane.b32.xlu1 %v1710_v39, 264  ;;  %618 = vbcast.lane.b32.xlu0 %v1710_v39, 256 }
  0xab   :  { %556 = vbcast.lane.b32.xlu1 %v550_v7, 264  ;;  %552 = vbcast.lane.b32.xlu0 %v550_v7, 256 }
  0xaf   :  { %633 = vbcast.lane.b32.xlu1 %v1712_v40, 264  ;;  %629 = vbcast.lane.b32.xlu0 %v1712_v40, 256 }
  0xb1   :  { %v322_v10 = vpop.permute.xlu1 %321  ;;  %v311_v11 = vpop.permute.xlu0 %310 }
  0xb2   :  { %vm659_vm6 = vcmp.eq.s32.totalorder %v322_v10, %v1769_v9  ;;  %vm657_vm7 = vcmp.eq.s32.totalorder %v311_v11, %v1769_v9 }
  0xb3   :  { %567 = vbcast.lane.b32.xlu1 %v1717_v42, 264  ;;  %563 = vbcast.lane.b32.xlu0 %v1717_v42, 256  ;;  %v1337_v12 = vsel %vm659_vm6, 1.0, %v1580_v1  ;;  %v1335_v0 = vsel %vm657_vm7, 1.0, %v1580_v1 }
  0xb4   :  { %v859_v18 = vsel %vm849_vm8, %v1337_v12, 0.0  ;;  %v850_v19 = vsel %vm849_vm8, %v1335_v0, 0.0 }
  0xb5   :  { %v326_v13 = vpop.permute.xlu1 %325  ;;  %v315_v15 = vpop.permute.xlu0 %314 }
  0xb6   :  { %vm660_vm9 = vcmp.eq.s32.totalorder %v326_v13, %v1769_v9  ;;  %vm658_vm10 = vcmp.eq.s32.totalorder %v315_v15, %v1769_v9 }
  0xb7   :  { %v1338_v16 = vsel %vm660_vm9, 1.0, %v1580_v1  ;;  %v1336_v17 = vsel %vm658_vm10, 1.0, %v1580_v1  ;;  %644 = vbcast.lane.b32.xlu1 %v1720_v43, 264  ;;  %640 = vbcast.lane.b32.xlu0 %v1720_v43, 256 }
  0xb8   :  { %v860_v20 = vsel %vm849_vm8, %v1338_v16, 0.0  ;;  %v851_v21 = vsel %vm849_vm8, %v1336_v17, 0.0 }
  0xb9   :  { %v861_v22 = vadd.f32 %v860_v20, %v859_v18  ;;  %v852_v23 = vadd.f32 %v851_v21, %v850_v19  ;;  %v337_v24 = vpop.permute.xlu1 %336  ;;  %v333_v25 = vpop.permute.xlu0 %332 }
  0xba   :  { %vm662_vm11 = vcmp.eq.s32.totalorder %v337_v24, %v1769_v9  ;;  %vm661_vm12 = vcmp.eq.s32.totalorder %v333_v25, %v1769_v9 }
  0xbb   :  { %v862_v26 = vrot.slane %v861_v22, 4  ;;  %v853_v27 = vrot.slane %v852_v23, 4  ;;  %v1340_v28 = vsel %vm662_vm11, 1.0, %v1580_v1  ;;  %v1339_v29 = vsel %vm661_vm12, 1.0, %v1580_v1  ;;  %655 = vbcast.lane.b32.xlu1 %v1722_v44, 264  ;;  %651 = vbcast.lane.b32.xlu0 %v1722_v44, 256 }
  0xbc   :  { %v869_v30 = vsel %vm849_vm8, %v1340_v28, 0.0  ;;  %v868_v31 = vsel %vm849_vm8, %v1339_v29, 0.0  ;;  %vm1175_vm12 = vcmask 1043459  }
  0xbd   :  { %v863_v32 = vadd.f32 %v862_v26, %v861_v22  ;;  %v854_v33 = vadd.f32 %v853_v27, %v852_v23  ;;  %v870_v34 = vadd.f32 %v869_v30, %v868_v31  ;;  %v403_v35 = vpop.permute.xlu1 %402  ;;  %v399_v36 = vpop.permute.xlu0 %398 }
  0xbe   :  { %vm674_vm13 = vcmp.eq.s32.totalorder %v403_v35, %v1769_v9  ;;  %vm673_vm14 = vcmp.eq.s32.totalorder %v399_v36, %v1769_v9 }
  0xbf   :  { %v864_v37 = vrot.slane %v863_v32, 2  ;;  %v855_v38 = vrot.slane %v854_v33, 2  ;;  %v871_v39 = vrot.slane %v870_v34, 4  ;;  %v1352_v40 = vsel %vm674_vm13, 1.0, %v1580_v1 }
  0xc0   :  { %v923_v41 = vsel %vm849_vm8, %v1352_v40, 0.0  ;;  %v1351_v42 = vsel %vm673_vm14, 1.0, %v1580_v1 }
  0xc1   :  { %v865_v43 = vadd.f32 %v864_v37, %v863_v32  ;;  %v856_v44 = vadd.f32 %v855_v38, %v854_v33  ;;  %v872_v45 = vadd.f32 %v871_v39, %v870_v34  ;;  %v922_v46 = vsel %vm849_vm8, %v1351_v42, 0.0  ;;  %v414_v47 = vpop.permute.xlu1 %413  ;;  %v410_v48 = vpop.permute.xlu0 %409 }
  0xc2   :  { %v924_v49 = vadd.f32 %v923_v41, %v922_v46  ;;  %vm676_vm0 = vcmp.eq.s32.totalorder %v414_v47, %v1769_v9  ;;  %vm675_vm1 = vcmp.eq.s32.totalorder %v410_v48, %v1769_v9 }
  0xc3   :  { %v866_v50 = vrot.slane %v865_v43, 1  ;;  %v857_v51 = vrot.slane %v856_v44, 1  ;;  %v873_v52 = vrot.slane %v872_v45, 2  ;;  %v1354_v53 = vsel %vm676_vm0, 1.0, %v1580_v1 }
  0xc4   :  { %v925_v54 = vrot.slane %v924_v49, 4  ;;  %v932_v55 = vsel %vm849_vm8, %v1354_v53, 0.0  ;;  %v1353_v56 = vsel %vm675_vm1, 1.0, %v1580_v1 }
  0xc5   :  { %v867_v57 = vadd.f32 %v866_v50, %v865_v43  ;;  %v858_v58 = vadd.f32 %v857_v51, %v856_v44  ;;  %v874_v59 = vadd.f32 %v873_v52, %v872_v45  ;;  %v931_v60 = vsel %vm849_vm8, %v1353_v56, 0.0  ;;  %v348_v61 = vpop.permute.xlu1 %347  ;;  %v344_v62 = vpop.permute.xlu0 %343 }
  0xc6   :  { %v926_v63 = vadd.f32 %v925_v54, %v924_v49  ;;  %v933_v2 = vadd.f32 %v932_v55, %v931_v60  ;;  %vm664_vm3 = vcmp.eq.s32.totalorder %v348_v61, %v1769_v9  ;;  %vm663_vm4 = vcmp.eq.s32.totalorder %v344_v62, %v1769_v9 }
  0xc7   :  { %v1172_v3 = vsel %vm1171_vm15, %v867_v57, %v858_v58  ;;  %v875_v4 = vrot.slane %v874_v59, 1  ;;  %v1342_v5 = vsel %vm664_vm3, 1.0, %v1580_v1  ;;  %v1341_v7 = vsel %vm663_vm4, 1.0, %v1580_v1 }
  0xc8   :  { %v927_v10 = vrot.slane %v926_v63, 2  ;;  %v934_v11 = vrot.slane %v933_v2, 4  ;;  %v878_v12 = vsel %vm849_vm8, %v1342_v5, 0.0  ;;  %v877_v0 = vsel %vm849_vm8, %v1341_v7, 0.0 }
  0xc9   :  { %v876_v13 = vadd.f32 %v875_v4, %v874_v59  ;;  %v879_v15 = vadd.f32 %v878_v12, %v877_v0  ;;  %v425_v16 = vpop.permute.xlu1 %424  ;;  %v421_v17 = vpop.permute.xlu0 %420  ;;  %vm1177_vm3 = vcmask 1044484  }
  0xca   :  { %v928_v18 = vadd.f32 %v927_v10, %v926_v63  ;;  %v935_v19 = vadd.f32 %v934_v11, %v933_v2  ;;  %vm678_vm5 = vcmp.eq.s32.totalorder %v425_v16, %v1769_v9  ;;  %vm677_vm6 = vcmp.eq.s32.totalorder %v421_v17, %v1769_v9 }
  0xcb   :  { %v1174_v20 = vsel %vm1173_vm2, %v876_v13, %v1172_v3  ;;  %v880_v21 = vrot.slane %v879_v15, 4  ;;  %v1356_v22 = vsel %vm678_vm5, 1.0, %v1580_v1  ;;  %v1355_v23 = vsel %vm677_vm6, 1.0, %v1580_v1 }
  0xcc   :  { %v936_v24 = vrot.slane %v935_v19, 2  ;;  %v941_v25 = vsel %vm849_vm8, %v1356_v22, 0.0  ;;  %v940_v26 = vsel %vm849_vm8, %v1355_v23, 0.0  ;;  %v929_v31 = vrot.slane %v928_v18, 1 }
  0xcd   :  { %v881_v27 = vadd.f32 %v880_v21, %v879_v15  ;;  %v942_v28 = vadd.f32 %v941_v25, %v940_v26  ;;  %v359_v29 = vpop.permute.xlu1 %358  ;;  %v355_v30 = vpop.permute.xlu0 %354 }
  0xce   :  { %v937_v32 = vadd.f32 %v936_v24, %v935_v19  ;;  %vm666_vm7 = vcmp.eq.s32.totalorder %v359_v29, %v1769_v9  ;;  %vm665_vm9 = vcmp.eq.s32.totalorder %v355_v30, %v1769_v9  ;;  %v930_v45 = vadd.f32 %v929_v31, %v928_v18 }
  0xcf   :  { %v882_v33 = vrot.slane %v881_v27, 2  ;;  %v943_v34 = vrot.slane %v942_v28, 4  ;;  %v1344_v35 = vsel %vm666_vm7, 1.0, %v1580_v1  ;;  %v1343_v36 = vsel %vm665_vm9, 1.0, %v1580_v1 }
  0xd0   :  { %v938_v37 = vrot.slane %v937_v32, 1  ;;  %v887_v38 = vsel %vm849_vm8, %v1344_v35, 0.0  ;;  %v886_v39 = vsel %vm849_vm8, %v1343_v36, 0.0  ;;  %vm1179_vm9 = vcmask 1045509  }
  0xd1   :  { %v883_v40 = vadd.f32 %v882_v33, %v881_v27  ;;  %v944_v41 = vadd.f32 %v943_v34, %v942_v28  ;;  %v888_v42 = vadd.f32 %v887_v38, %v886_v39  ;;  %v436_v43 = vpop.permute.xlu1 %435  ;;  %v432_v44 = vpop.permute.xlu0 %431 }
  0xd2   :  { %v939_v46 = vadd.f32 %v938_v37, %v937_v32  ;;  %vm680_vm10 = vcmp.eq.s32.totalorder %v436_v43, %v1769_v9  ;;  %vm679_vm11 = vcmp.eq.s32.totalorder %v432_v44, %v1769_v9 }
  0xd3   :  { %v884_v47 = vrot.slane %v883_v40, 1  ;;  %v945_v48 = vrot.slane %v944_v41, 2  ;;  %v889_v49 = vrot.slane %v888_v42, 4  ;;  %v1358_v50 = vsel %vm680_vm10, 1.0, %v1580_v1 }
  0xd4   :  { %v1185_v51 = vsel %vm1171_vm15, %v939_v46, %v930_v45  ;;  %v950_v52 = vsel %vm849_vm8, %v1358_v50, 0.0  ;;  %v1357_v53 = vsel %vm679_vm11, 1.0, %v1580_v1 }
  0xd5   :  { %v885_v54 = vadd.f32 %v884_v47, %v883_v40  ;;  %v946_v55 = vadd.f32 %v945_v48, %v944_v41  ;;  %v890_v56 = vadd.f32 %v889_v49, %v888_v42  ;;  %v949_v57 = vsel %vm849_vm8, %v1357_v53, 0.0  ;;  %v370_v58 = vpop.permute.xlu1 %369  ;;  %v366_v59 = vpop.permute.xlu0 %365 }
  0xd6   :  { %v951_v60 = vadd.f32 %v950_v52, %v949_v57  ;;  %vm668_vm13 = vcmp.eq.s32.totalorder %v370_v58, %v1769_v9  ;;  %vm667_vm14 = vcmp.eq.s32.totalorder %v366_v59, %v1769_v9 }
  0xd7   :  { %v947_v61 = vrot.slane %v946_v55, 1  ;;  %v891_v62 = vrot.slane %v890_v56, 2  ;;  %v1346_v63 = vsel %vm668_vm13, 1.0, %v1580_v1  ;;  %v1345_v2 = vsel %vm667_vm14, 1.0, %v1580_v1 }
  0xd8   :  { %v952_v3 = vrot.slane %v951_v60, 4  ;;  %v896_v4 = vsel %vm849_vm8, %v1346_v63, 0.0  ;;  %v895_v5 = vsel %vm849_vm8, %v1345_v2, 0.0  ;;  %v1176_v7 = vsel %vm1175_vm12, %v885_v54, %v1174_v20 }
  0xd9   :  { %v948_v10 = vadd.f32 %v947_v61, %v946_v55  ;;  %v892_v11 = vadd.f32 %v891_v62, %v890_v56  ;;  %v897_v12 = vadd.f32 %v896_v4, %v895_v5  ;;  %v447_v0 = vpop.permute.xlu1 %446  ;;  %v443_v13 = vpop.permute.xlu0 %442 }
  0xda   :  { %v953_v15 = vadd.f32 %v952_v3, %v951_v60  ;;  %vm682_vm0 = vcmp.eq.s32.totalorder %v447_v0, %v1769_v9  ;;  %vm681_vm1 = vcmp.eq.s32.totalorder %v443_v13, %v1769_v9 }
  0xdb   :  { %v1186_v16 = vsel %vm1173_vm2, %v948_v10, %v1185_v51  ;;  %v893_v17 = vrot.slane %v892_v11, 1  ;;  %v898_v18 = vrot.slane %v897_v12, 4  ;;  %v1360_v19 = vsel %vm682_vm0, 1.0, %v1580_v1 }
  0xdc   :  { %v954_v21 = vrot.slane %v953_v15, 2  ;;  %v959_v22 = vsel %vm849_vm8, %v1360_v19, 0.0  ;;  %v1359_v20 = vsel %vm681_vm1, 1.0, %v1580_v1 }
  0xdd   :  { %v894_v23 = vadd.f32 %v893_v17, %v892_v11  ;;  %v899_v24 = vadd.f32 %v898_v18, %v897_v12  ;;  %v958_v25 = vsel %vm849_vm8, %v1359_v20, 0.0  ;;  %v491_v26 = vpop.permute.xlu1 %490  ;;  %v487_v27 = vpop.permute.xlu0 %486 }
  0xde   :  { %v955_v28 = vadd.f32 %v954_v21, %v953_v15  ;;  %v960_v29 = vadd.f32 %v959_v22, %v958_v25  ;;  %vm690_vm4 = vcmp.eq.s32.totalorder %v491_v26, %v1769_v9  ;;  %vm689_vm5 = vcmp.eq.s32.totalorder %v487_v27, %v1769_v9 }
  0xdf   :  { %v900_v30 = vrot.slane %v899_v24, 2  ;;  %v1368_v31 = vsel %vm690_vm4, 1.0, %v1580_v1  ;;  %v1367_v32 = vsel %vm689_vm5, 1.0, %v1580_v1  ;;  %v1178_v33 = vsel %vm1177_vm3, %v894_v23, %v1176_v7 }
  0xe0   :  { %v956_v34 = vrot.slane %v955_v28, 1  ;;  %v961_v35 = vrot.slane %v960_v29, 4  ;;  %v995_v36 = vsel %vm849_vm8, %v1368_v31, 0.0  ;;  %v994_v37 = vsel %vm849_vm8, %v1367_v32, 0.0 }
  0xe1   :  { %v901_v38 = vadd.f32 %v900_v30, %v899_v24  ;;  %v996_v39 = vadd.f32 %v995_v36, %v994_v37  ;;  %v502_v40 = vpop.permute.xlu1 %501  ;;  %v498_v41 = vpop.permute.xlu0 %497  ;;  %vm1181_vm4 = vcmask 1046534  }
  0xe2   :  { %v957_v42 = vadd.f32 %v956_v34, %v955_v28  ;;  %v962_v43 = vadd.f32 %v961_v35, %v960_v29  ;;  %vm692_vm6 = vcmp.eq.s32.totalorder %v502_v40, %v1769_v9  ;;  %vm691_vm7 = vcmp.eq.s32.totalorder %v498_v41, %v1769_v9 }
  0xe3   :  { %v902_v44 = vrot.slane %v901_v38, 1  ;;  %v997_v45 = vrot.slane %v996_v39, 4  ;;  %v1370_v46 = vsel %vm692_vm6, 1.0, %v1580_v1  ;;  %v1369_v47 = vsel %vm691_vm7, 1.0, %v1580_v1 }
  0xe4   :  { %v1187_v48 = vsel %vm1175_vm12, %v957_v42, %v1186_v16  ;;  %v963_v49 = vrot.slane %v962_v43, 2  ;;  %v1004_v50 = vsel %vm849_vm8, %v1370_v46, 0.0  ;;  %v1003_v51 = vsel %vm849_vm8, %v1369_v47, 0.0 }
  0xe5   :  { %v903_v52 = vadd.f32 %v902_v44, %v901_v38  ;;  %v998_v53 = vadd.f32 %v997_v45, %v996_v39  ;;  %v1005_v54 = vadd.f32 %v1004_v50, %v1003_v51  ;;  %v381_v55 = vpop.permute.xlu1 %380  ;;  %v377_v56 = vpop.permute.xlu0 %376 }
  0xe6   :  { %v964_v57 = vadd.f32 %v963_v49, %v962_v43  ;;  %vm670_vm10 = vcmp.eq.s32.totalorder %v381_v55, %v1769_v9  ;;  %vm669_vm11 = vcmp.eq.s32.totalorder %v377_v56, %v1769_v9 }
  0xe7   :  { %v999_v58 = vrot.slane %v998_v53, 2  ;;  %v1006_v59 = vrot.slane %v1005_v54, 4  ;;  %v1348_v60 = vsel %vm670_vm10, 1.0, %v1580_v1  ;;  %v1347_v61 = vsel %vm669_vm11, 1.0, %v1580_v1 }
  0xe8   :  { %v965_v62 = vrot.slane %v964_v57, 1  ;;  %v905_v63 = vsel %vm849_vm8, %v1348_v60, 0.0  ;;  %v904_v2 = vsel %vm849_vm8, %v1347_v61, 0.0  ;;  %v1180_v3 = vsel %vm1179_vm9, %v903_v52, %v1178_v33 }
  0xe9   :  { %v1000_v4 = vadd.f32 %v999_v58, %v998_v53  ;;  %v1007_v5 = vadd.f32 %v1006_v59, %v1005_v54  ;;  %v906_v7 = vadd.f32 %v905_v63, %v904_v2  ;;  %v458_v10 = vpop.permute.xlu1 %457  ;;  %v454_v11 = vpop.permute.xlu0 %453 }
  0xea   :  { %v966_v12 = vadd.f32 %v965_v62, %v964_v57  ;;  %vm684_vm13 = vcmp.eq.s32.totalorder %v458_v10, %v1769_v9  ;;  %vm683_vm14 = vcmp.eq.s32.totalorder %v454_v11, %v1769_v9 }
  0xeb   :  { %v1008_v0 = vrot.slane %v1007_v5, 2  ;;  %v907_v13 = vrot.slane %v906_v7, 4  ;;  %v1362_v15 = vsel %vm684_vm13, 1.0, %v1580_v1  ;;  %v1361_v17 = vsel %vm683_vm14, 1.0, %v1580_v1 }
  0xec   :  { %v968_v16 = vsel %vm849_vm8, %v1362_v15, 0.0  ;;  %v1188_v18 = vsel %vm1177_vm3, %v966_v12, %v1187_v48  ;;  %v1001_v19 = vrot.slane %v1000_v4, 1  ;;  %v967_v20 = vsel %vm849_vm8, %v1361_v17, 0.0 }
  0xed   :  { %v1009_v21 = vadd.f32 %v1008_v0, %v1007_v5  ;;  %v908_v22 = vadd.f32 %v907_v13, %v906_v7  ;;  %v513_v23 = vpop.permute.xlu1 %512  ;;  %v509_v24 = vpop.permute.xlu0 %508  ;;  %v969_v25 = vadd.f32 %v968_v16, %v967_v20 }
  0xee   :  { %vm694_vm0 = vcmp.eq.s32.totalorder %v513_v23, %v1769_v9  ;;  %vm693_vm1 = vcmp.eq.s32.totalorder %v509_v24, %v1769_v9  ;;  %v1002_v33 = vadd.f32 %v1001_v19, %v1000_v4 }
  0xef   :  { %v1010_v26 = vrot.slane %v1009_v21, 1  ;;  %v909_v27 = vrot.slane %v908_v22, 2  ;;  %v1372_v28 = vsel %vm694_vm0, 1.0, %v1580_v1  ;;  %v1371_v29 = vsel %vm693_vm1, 1.0, %v1580_v1 }
  0xf0   :  { %v970_v30 = vrot.slane %v969_v25, 4  ;;  %v1013_v31 = vsel %vm849_vm8, %v1372_v28, 0.0  ;;  %v1012_v32 = vsel %vm849_vm8, %v1371_v29, 0.0  ;;  %vm1183_vm1 = vcmask 1047559  }
  0xf1   :  { %v1011_v34 = vadd.f32 %v1010_v26, %v1009_v21  ;;  %v910_v35 = vadd.f32 %v909_v27, %v908_v22  ;;  %v1014_v36 = vadd.f32 %v1013_v31, %v1012_v32  ;;  %v579_v37 = vpop.permute.xlu1 %578  ;;  %v575_v38 = vpop.permute.xlu0 %574 }
  0xf2   :  { %v971_v39 = vadd.f32 %v970_v30, %v969_v25  ;;  %vm706_vm11 = vcmp.eq.s32.totalorder %v579_v37, %v1769_v9  ;;  %vm705_vm0 = vcmp.eq.s32.totalorder %v575_v38, %v1769_v9 }
  0xf3   :  { %v1192_v40 = vsel %vm1171_vm15, %v1011_v34, %v1002_v33  ;;  %v911_v41 = vrot.slane %v910_v35, 1  ;;  %v1015_v42 = vrot.slane %v1014_v36, 4  ;;  %v1384_v23 = vsel %vm706_vm11, 1.0, %v1580_v1 }
  0xf4   :  { %v972_v43 = vrot.slane %v971_v39, 2  ;;  %v1383_v28 = vsel %vm705_vm0, 1.0, %v1580_v1  ;;  %v1067_v32 = vsel %vm849_vm8, %v1384_v23, 0.0 }
  0xf5   :  { %v912_v44 = vadd.f32 %v911_v41, %v910_v35  ;;  %v1016_v45 = vadd.f32 %v1015_v42, %v1014_v36  ;;  %v1885_v46 = vpop.permute.xlu1 %589  ;;  %v1887_v47 = vpop.permute.xlu0 %585  ;;  %v1066_v34 = vsel %vm849_vm8, %v1383_v28, 0.0 }
  0xf6   :  { %v973_v48 = vadd.f32 %v972_v43, %v971_v39 }
  0xf7   :  { %v1017_v49 = vrot.slane %v1016_v45, 2  ;;  %v1890_v50 = vsel %vm1181_vm4, %v912_v44, %v1180_v3 }
  0xf8   :  { %v974_v51 = vrot.slane %v973_v48, 1 }
  0xf9   :  { %v1018_v52 = vadd.f32 %v1017_v49, %v1016_v45  ;;  %v392_v53 = vpop.permute.xlu1 %391  ;;  %v388_v54 = vpop.permute.xlu0 %387  ;;  %v1935_v49 = vadd.f32 %v1067_v32, %v1066_v34 }
  0xfa   :  { %v975_v55 = vadd.f32 %v974_v51, %v973_v48  ;;  %vm672_vm5 = vcmp.eq.s32.totalorder %v392_v53, %v1769_v9  ;;  %vm671_vm6 = vcmp.eq.s32.totalorder %v388_v54, %v1769_v9 }
  0xfb   :  { %v1019_v56 = vrot.slane %v1018_v52, 1  ;;  %v1350_v57 = vsel %vm672_vm5, 1.0, %v1580_v1  ;;  %v1349_v58 = vsel %vm671_vm6, 1.0, %v1580_v1  ;;  %vm708_vm5 = vcmp.eq.s32.totalorder %v1885_v46, %v1769_v9 }
  0xfc   :  { %v914_v59 = vsel %vm849_vm8, %v1350_v57, 0.0  ;;  %v913_v60 = vsel %vm849_vm8, %v1349_v58, 0.0  ;;  %v1899_v61 = vsel %vm1179_vm9, %v975_v55, %v1188_v18  ;;  %vm707_vm6 = vcmp.eq.s32.totalorder %v1887_v47, %v1769_v9 }
  0xfd   :  { %v1020_v62 = vadd.f32 %v1019_v56, %v1018_v52  ;;  %v915_v63 = vadd.f32 %v914_v59, %v913_v60  ;;  %v469_v2 = vpop.permute.xlu1 %468  ;;  %v465_v3 = vpop.permute.xlu0 %464  ;;  %v1386_v51 = vsel %vm708_vm5, 1.0, %v1580_v1 }
  0xfe   :  { %vm686_vm7 = vcmp.eq.s32.totalorder %v469_v2, %v1769_v9  ;;  %vm685_vm10 = vcmp.eq.s32.totalorder %v465_v3, %v1769_v9 }
  0xff   :  { %v1904_v4 = vsel %vm1173_vm2, %v1020_v62, %v1192_v40  ;;  %v916_v5 = vrot.slane %v915_v63, 4  ;;  %v1364_v7 = vsel %vm686_vm7, 1.0, %v1580_v1  ;;  %v1363_v11 = vsel %vm685_vm10, 1.0, %v1580_v1 }
 0x100   :  { %v977_v10 = vsel %vm849_vm8, %v1364_v7, 0.0  ;;  %v976_v0 = vsel %vm849_vm8, %v1363_v11, 0.0  ;;  %v91_v11 = vld [vmem:[#allocation7 + $0x18] sm:$0xff] }
 0x101   :  { %v917_v12 = vadd.f32 %v916_v5, %v915_v63  ;;  %v524_v13 = vpop.permute.xlu1 %523  ;;  %v520_v15 = vpop.permute.xlu0 %519  ;;  %v978_v16 = vadd.f32 %v977_v10, %v976_v0  ;;  %v90_v10 = vld [vmem:[#allocation7 + $0x10] sm:$0xff] }
 0x102   :  { %vm696_vm13 = vcmp.eq.s32.totalorder %v524_v13, %v1769_v9  ;;  %vm695_vm14 = vcmp.eq.s32.totalorder %v520_v15, %v1769_v9 }
 0x103   :  { %v918_v17 = vrot.slane %v917_v12, 2  ;;  %v1374_v18 = vsel %vm696_vm13, 1.0, %v1580_v1  ;;  %v1373_v19 = vsel %vm695_vm14, 1.0, %v1580_v1  ;;  %v979_v21 = vrot.slane %v978_v16, 4 }
 0x104   :  { %v1022_v22 = vsel %vm849_vm8, %v1374_v18, 0.0  ;;  %v1021_v20 = vsel %vm849_vm8, %v1373_v19, 0.0  ;;  %v1968_v19 = vpack.c.bf16 %v91_v11, %v90_v10 }
 0x105   :  { %v919_v24 = vadd.f32 %v918_v17, %v917_v12  ;;  %v1023_v25 = vadd.f32 %v1022_v22, %v1021_v20  ;;  %v601_v26 = vpop.permute.xlu1 %600  ;;  %v597_v27 = vpop.permute.xlu0 %596  ;;  %v980_v29 = vadd.f32 %v979_v21, %v978_v16  ;;  %v1076_v12 = vsel %vm849_vm8, %v1386_v51, 0.0 }
 0x106   :  { %vm710_vm14 = vcmp.eq.s32.totalorder %v601_v26, %v1769_v9  ;;  %vm709_vm0 = vcmp.eq.s32.totalorder %v597_v27, %v1769_v9  ;;  %v1069_v16 = vrot.slane %v1935_v49, 4 }
 0x107   :  { %v920_v30 = vrot.slane %v919_v24, 1  ;;  %v1024_v31 = vrot.slane %v1023_v25, 4  ;;  %v981_v33 = vrot.slane %v980_v29, 2  ;;  %v1387_v17 = vsel %vm709_vm0, 1.0, %v1580_v1 }
 0x109   :  { %v1025_v35 = vadd.f32 %v1024_v31, %v1023_v25  ;;  %v480_v36 = vpop.permute.xlu1 %479  ;;  %v476_v37 = vpop.permute.xlu0 %475  ;;  %v921_v38 = vadd.f32 %v920_v30, %v919_v24  ;;  %v982_v39 = vadd.f32 %v981_v33, %v980_v29 }
 0x10a   :  { %vm688_vm7 = vcmp.eq.s32.totalorder %v480_v36, %v1769_v9  ;;  %vm687_vm10 = vcmp.eq.s32.totalorder %v476_v37, %v1769_v9 }
 0x10b   :  { %v1026_v40 = vrot.slane %v1025_v35, 2  ;;  %v1366_v41 = vsel %vm688_vm7, 1.0, %v1580_v1  ;;  %v1365_v42 = vsel %vm687_vm10, 1.0, %v1580_v1  ;;  %v1184_v43 = vsel %vm1183_vm1, %v921_v38, %v1890_v50 }
 0x10c   :  { %v983_v44 = vrot.slane %v982_v39, 1  ;;  %v986_v45 = vsel %vm849_vm8, %v1366_v41, 0.0  ;;  %v985_v48 = vsel %vm849_vm8, %v1365_v42, 0.0  ;;  %1458 = vmatprep.mubr.msk.f32.mxu1 %vm849_vm8, %v1184_v43  ;;  %v1385_v50 = vsel %vm707_vm6, 1.0, %v1580_v1 }
 0x10d   :  { %v1027_v52 = vadd.f32 %v1026_v40, %v1025_v35  ;;  %v987_v53 = vadd.f32 %v986_v45, %v985_v48  ;;  %v535_v54 = vpop.permute.xlu1 %534  ;;  %v531_v55 = vpop.permute.xlu0 %530  ;;  %v1075_v0 = vsel %vm849_vm8, %v1385_v50, 0.0  ;;  %vm192_vm6 = vcmask 261120  }
 0x10e   :  { %v984_v56 = vadd.f32 %v983_v44, %v982_v39  ;;  %vm698_vm11 = vcmp.eq.s32.totalorder %v535_v54, %v1769_v9  ;;  %vm697_vm13 = vcmp.eq.s32.totalorder %v531_v55, %v1769_v9  ;;  %v1974_v22 = vadd.f32 %v1076_v12, %v1075_v0 }
 0x10f   :  { %v1028_v57 = vrot.slane %v1027_v52, 1  ;;  %v988_v58 = vrot.slane %v987_v53, 4  ;;  %v1376_v59 = vsel %vm698_vm11, 1.0, %v1580_v1  ;;  %v1375_v46 = vsel %vm697_vm13, 1.0, %v1580_v1 }
 0x110   :  { %v1031_v60 = vsel %vm849_vm8, %v1376_v59, 0.0  ;;  %v1030_v62 = vsel %vm849_vm8, %v1375_v46, 0.0  ;;  %v1954_v47 = vsel %vm1181_vm4, %v984_v56, %v1899_v61  ;;  %v1388_v61 = vsel %vm710_vm14, 1.0, %v1580_v1 }
 0x111   :  { %v1029_v63 = vadd.f32 %v1028_v57, %v1027_v52  ;;  %v989_v2 = vadd.f32 %v988_v58, %v987_v53  ;;  %v1032_v3 = vadd.f32 %v1031_v60, %v1030_v62  ;;  %v612_v5 = vpop.permute.xlu1 %611  ;;  %v608_v7 = vpop.permute.xlu0 %607  ;;  %v1085_v28 = vsel %vm849_vm8, %v1388_v61, 0.0 }
 0x112   :  { %vm712_vm5 = vcmp.eq.s32.totalorder %v612_v5, %v1769_v9  ;;  %vm711_vm7 = vcmp.eq.s32.totalorder %v608_v7, %v1769_v9  ;;  %v1070_v55 = vadd.f32 %v1069_v16, %v1935_v49 }
 0x113   :  { %v990_v13 = vrot.slane %v989_v2, 2  ;;  %v1033_v15 = vrot.slane %v1032_v3, 4  ;;  %v139_v18 = vpop.f32.mrb[0].mxu0  ;;  %v1972_v21 = vsel %vm1175_vm12, %v1029_v63, %v1904_v4  ;;  %v1390_v24 = vsel %vm712_vm5, 1.0, %v1580_v1 }
 0x114   :  { %v1389_v27 = vsel %vm711_vm7, 1.0, %v1580_v1  ;;  %v1432_v29 = vpop.f32.mrb[1].mxu0  ;;  %v183_v30 = vpop.f32.mrb[0].mxu1  ;;  %v1084_v4 = vsel %vm849_vm8, %v1387_v17, 0.0  ;;  %v1094_v36 = vsel %vm849_vm8, %v1390_v24, 0.0 }
 0x115   :  { %v991_v20 = vadd.f32 %v990_v13, %v989_v2  ;;  %v1034_v23 = vadd.f32 %v1033_v15, %v1032_v3  ;;  %v546_v25 = vpop.permute.xlu1 %545  ;;  %v542_v26 = vpop.permute.xlu0 %541  ;;  %v1093_v44 = vsel %vm849_vm8, %v1389_v27, 0.0  ;;  %v1086_v62 = vadd.f32 %v1085_v28, %v1084_v4 }
 0x116   :  { %vm700_vm10 = vcmp.eq.s32.totalorder %v546_v25, %v1769_v9  ;;  %vm699_vm11 = vcmp.eq.s32.totalorder %v542_v26, %v1769_v9  ;;  %v142_v34 = vpop.f32.mrb[2].mxu0  ;;  %v1438_v35 = vpop.f32.mrb[1].mxu1  ;;  %v1095_v2 = vadd.f32 %v1094_v36, %v1093_v44  ;;  %v1071_v13 = vrot.slane %v1070_v55, 2 }
 0x117   :  { %v992_v31 = vrot.slane %v991_v20, 1  ;;  %v1035_v32 = vrot.slane %v1034_v23, 2  ;;  %v1378_v33 = vsel %vm700_vm10, 1.0, %v1580_v1  ;;  %v1377_v38 = vsel %vm699_vm11, 1.0, %v1580_v1  ;;  %v186_v40 = vpop.f32.mrb[2].mxu1  ;;  %v1433_v41 = vpop.f32.mrb[3].mxu0 }
 0x118   :  { %v1040_v37 = vsel %vm849_vm8, %v1378_v33, 0.0  ;;  %v190_v39 = vpack.c.bf16 %v142_v34, %v139_v18  ;;  %v1039_v45 = vsel %vm849_vm8, %v1377_v38, 0.0  ;;  %v191_v53 = vpack.c.bf16 %v186_v40, %v183_v30  ;;  %v1439_v54 = vpop.f32.mrb[3].mxu1 }
 0x119   :  { %v993_v42 = vadd.f32 %v992_v31, %v991_v20  ;;  %v1036_v43 = vadd.f32 %v1035_v32, %v1034_v23  ;;  %v623_v48 = vpop.permute.xlu1 %622  ;;  %v619_v51 = vpop.permute.xlu0 %618  ;;  %v1041_v52 = vadd.f32 %v1040_v37, %v1039_v45  ;;  %v1087_v15 = vrot.slane %v1086_v62, 4 }
 0x11a   :  { %vm714_vm13 = vcmp.eq.s32.totalorder %v623_v48, %v1769_v9  ;;  %vm713_vm14 = vcmp.eq.s32.totalorder %v619_v51, %v1769_v9  ;;  %1444 = vmatprep.mubr.msk.bf16.mxu0 %vm192_vm6, %v190_v39  ;;  %v1096_v18 = vrot.slane %v1095_v2, 4 }
 0x11b   :  { %v1037_v50 = vrot.slane %v1036_v43, 1  ;;  %v1392_v56 = vsel %vm714_vm13, 1.0, %v1580_v1  ;;  %v1391_v57 = vsel %vm713_vm14, 1.0, %v1580_v1  ;;  %v1042_v58 = vrot.slane %v1041_v52, 4  ;;  %1445 = vmatmul.mubr.msk.bf16.vlgmr.msra.gmra.mrb[4].mxu0 %vm192_vm6, %v191_v53 }
 0x11c   :  { %v1103_v59 = vsel %vm849_vm8, %v1392_v56, 0.0  ;;  %v1102_v46 = vsel %vm849_vm8, %v1391_v57, 0.0  ;;  %v1191_v60 = vsel %vm1183_vm1, %v993_v42, %v1954_v47  ;;  %1449 = vmatpush3.bf16.msra.mxu0 %v1757_v6  ;;  %1452 = vmatprep.mubr.msk.bf16.mxu0 %vm192_vm6, %v1659_v8  ;;  %v1078_v47 = vrot.slane %v1974_v22, 4 }
 0x11d   :  { %v1038_v63 = vadd.f32 %v1037_v50, %v1036_v43  ;;  %1459 = vmatmul.mubr.msk.f32.vlgmr.msra.gmra.mrb[4].mxu1 %vm849_vm8, %v1191_v60  ;;  %v557_v49 = vpop.permute.xlu1 %556  ;;  %v553_v3 = vpop.permute.xlu0 %552  ;;  %v1043_v5 = vadd.f32 %v1042_v58, %v1041_v52  ;;  %1450 = vmatprep.subr.bf16.mxu0 %v1968_v19  ;;  %v1104_v7 = vadd.f32 %v1103_v59, %v1102_v46 }
 0x11e   :  { %vm702_vm0 = vcmp.eq.s32.totalorder %v557_v49, %v1769_v9  ;;  %vm701_vm5 = vcmp.eq.s32.totalorder %v553_v3, %v1769_v9  ;;  %v1088_v30 = vadd.f32 %v1087_v15, %v1086_v62  ;;  %v1097_v34 = vadd.f32 %v1096_v18, %v1095_v2 }
 0x11f   :  { %v1380_v10 = vsel %vm702_vm0, 1.0, %v1580_v1  ;;  %v1379_v11 = vsel %vm701_vm5, 1.0, %v1580_v1  ;;  %v1044_v12 = vrot.slane %v1043_v5, 2  ;;  %v1195_v61 = vsel %vm1177_vm3, %v1038_v63, %v1972_v21 }
 0x120   :  { %v1049_v6 = vsel %vm849_vm8, %v1380_v10, 0.0  ;;  %v1048_v0 = vsel %vm849_vm8, %v1379_v11, 0.0  ;;  %1451 = vmatpush3.bf16.msra.mxu0 %v1968_v19  ;;  %v1105_v23 = vrot.slane %v1104_v7, 4  ;;  %v1079_v21 = vadd.f32 %v1078_v47, %v1974_v22 }
 0x121   :  { %v1050_v16 = vadd.f32 %v1049_v6, %v1048_v0  ;;  %v634_v17 = vpop.permute.xlu1 %633  ;;  %v630_v8 = vpop.permute.xlu0 %629  ;;  %v1045_v20 = vadd.f32 %v1044_v12, %v1043_v5  ;;  %v2021_v19 = vadd.f32 %v1071_v13, %v1070_v55  ;;  %v1089_v43 = vrot.slane %v1088_v30, 2 }
 0x122   :  { %vm716_vm7 = vcmp.eq.s32.totalorder %v634_v17, %v1769_v9  ;;  %vm715_vm10 = vcmp.eq.s32.totalorder %v630_v8, %v1769_v9  ;;  %v1106_v36 = vadd.f32 %v1105_v23, %v1104_v7  ;;  %v1080_v39 = vrot.slane %v1079_v21, 2 }
 0x123   :  { %v1051_v24 = vrot.slane %v1050_v16, 4  ;;  %v1394_v25 = vsel %vm716_vm7, 1.0, %v1580_v1  ;;  %v1393_v26 = vsel %vm715_vm10, 1.0, %v1580_v1  ;;  %v1046_v28 = vrot.slane %v1045_v20, 1 }
 0x124   :  { %v1112_v27 = vsel %vm849_vm8, %v1394_v25, 0.0  ;;  %v1111_v29 = vsel %vm849_vm8, %v1393_v26, 0.0  ;;  %v1098_v53 = vrot.slane %v1097_v34, 2  ;;  %v1107_v55 = vrot.slane %v1106_v36, 2 }
 0x125   :  { %v1052_v4 = vadd.f32 %v1051_v24, %v1050_v16  ;;  %v1113_v31 = vadd.f32 %v1112_v27, %v1111_v29  ;;  %v568_v32 = vpop.permute.xlu1 %567  ;;  %v564_v33 = vpop.permute.xlu0 %563  ;;  %v1047_v35 = vadd.f32 %v1046_v28, %v1045_v20  ;;  %v1081_v57 = vadd.f32 %v1080_v39, %v1079_v21 }
 0x126   :  { %vm704_vm11 = vcmp.eq.s32.totalorder %v568_v32, %v1769_v9  ;;  %vm703_vm13 = vcmp.eq.s32.totalorder %v564_v33, %v1769_v9  ;;  %v1090_v60 = vadd.f32 %v1089_v43, %v1088_v30  ;;  %v1099_v5 = vadd.f32 %v1098_v53, %v1097_v34 }
 0x127   :  { %v1053_v22 = vrot.slane %v1052_v4, 2  ;;  %v1114_v37 = vrot.slane %v1113_v31, 4  ;;  %v1382_v38 = vsel %vm704_vm11, 1.0, %v1580_v1  ;;  %v1381_v41 = vsel %vm703_vm13, 1.0, %v1580_v1  ;;  %1453 = vmatmul.mubr.msk.bf16.vlgmr.msra.gmra.mrb[4].mxu0 %vm192_vm6, %v1667_v14 }
 0x128   :  { %v1058_v40 = vsel %vm849_vm8, %v1382_v38, 0.0  ;;  %v1196_v42 = vsel %vm1179_vm9, %v1047_v35, %v1195_v61  ;;  %v1057_v48 = vsel %vm849_vm8, %v1381_v41, 0.0  ;;  %v1108_v7 = vadd.f32 %v1107_v55, %v1106_v36 }
 0x129   :  { %v1054_v44 = vadd.f32 %v1053_v22, %v1052_v4  ;;  %v1115_v45 = vadd.f32 %v1114_v37, %v1113_v31  ;;  %v645_v51 = vpop.permute.xlu1 %644  ;;  %v641_v52 = vpop.permute.xlu0 %640  ;;  %v1059_v54 = vadd.f32 %v1058_v40, %v1057_v48  ;;  %v1082_v15 = vrot.slane %v1081_v57, 1 }
 0x12a   :  { %vm718_vm14 = vcmp.eq.s32.totalorder %v645_v51, %v1769_v9  ;;  %vm717_vm0 = vcmp.eq.s32.totalorder %v641_v52, %v1769_v9  ;;  %v1091_v18 = vrot.slane %v1090_v60, 1  ;;  %v1100_v23 = vrot.slane %v1099_v5, 1 }
 0x12b   :  { %v1055_v50 = vrot.slane %v1054_v44, 1  ;;  %v1396_v56 = vsel %vm718_vm14, 1.0, %v1580_v1  ;;  %v1395_v14 = vsel %vm717_vm0, 1.0, %v1580_v1  ;;  %v1060_v58 = vrot.slane %v1059_v54, 4 }
 0x12c   :  { %v1121_v59 = vsel %vm849_vm8, %v1396_v56, 0.0  ;;  %v1120_v46 = vsel %vm849_vm8, %v1395_v14, 0.0  ;;  %v1116_v63 = vrot.slane %v1115_v45, 2  ;;  %v1109_v26 = vrot.slane %v1108_v7, 1 }
 0x12d   :  { %v1056_v62 = vadd.f32 %v1055_v50, %v1054_v44  ;;  %v1122_v2 = vadd.f32 %v1121_v59, %v1120_v46  ;;  %v656_v49 = vpop.permute.xlu1 %655  ;;  %v652_v3 = vpop.permute.xlu0 %651  ;;  %v1061_v47 = vadd.f32 %v1060_v58, %v1059_v54  ;;  %v1083_v21 = vadd.f32 %v1082_v15, %v1081_v57 }
 0x12e   :  { %vm720_vm6 = vcmp.eq.s32.totalorder %v656_v49, %v1769_v9  ;;  %vm719_vm5 = vcmp.eq.s32.totalorder %v652_v3, %v1769_v9  ;;  %v1117_v16 = vadd.f32 %v1116_v63, %v1115_v45  ;;  %v1073_v9 = vrot.slane %v2021_v19, 1 }
 0x12f   :  { %v1123_v10 = vrot.slane %v1122_v2, 4  ;;  %v1398_v11 = vsel %vm720_vm6, 1.0, %v1580_v1  ;;  %v1397_v12 = vsel %vm719_vm5, 1.0, %v1580_v1  ;;  %v1062_v6 = vrot.slane %v1061_v47, 2 }
 0x130   :  { %v1130_v0 = vsel %vm849_vm8, %v1398_v11, 0.0  ;;  %v1129_v61 = vsel %vm849_vm8, %v1397_v12, 0.0  ;;  %v1197_v13 = vsel %vm1181_vm4, %v1056_v62, %v1196_v42  ;;  %v1118_v28 = vrot.slane %v1117_v16, 1 }
 0x131   :  { %v1124_v17 = vadd.f32 %v1123_v10, %v1122_v2  ;;  %v1131_v8 = vadd.f32 %v1130_v0, %v1129_v61  ;;  %v1063_v20 = vadd.f32 %v1062_v6, %v1061_v47  ;;  %v1092_v30 = vadd.f32 %v1091_v18, %v1090_v60 }
 0x132   :  { %v1074_v31 = vadd.f32 %v1073_v9, %v2021_v19  ;;  %v1101_v32 = vadd.f32 %v1100_v23, %v1099_v5  ;;  %v1110_v35 = vadd.f32 %v1109_v26, %v1108_v7  ;;  %v1119_v37 = vadd.f32 %v1118_v28, %v1117_v16 }
 0x133   :  { %v1125_v24 = vrot.slane %v1124_v17, 2  ;;  %v1132_v25 = vrot.slane %v1131_v8, 4  ;;  %v1064_v1 = vrot.slane %v1063_v20, 1 }
 0x134   :  { %v1199_v22 = vsel %vm1171_vm15, %v1083_v21, %v1074_v31 }
 0x135   :  { %v1126_v27 = vadd.f32 %v1125_v24, %v1124_v17  ;;  %v1133_v29 = vadd.f32 %v1132_v25, %v1131_v8  ;;  %v1065_v4 = vadd.f32 %v1064_v1, %v1063_v20  ;;  %v1200_v39 = vsel %vm1173_vm2, %v1092_v30, %v1199_v22 }
 0x136   :  { %v1201_v42 = vsel %vm1175_vm12, %v1101_v32, %v1200_v39 }
 0x137   :  { %v1127_v33 = vrot.slane %v1126_v27, 1  ;;  %v1134_v34 = vrot.slane %v1133_v29, 2  ;;  %v1198_v36 = vsel %vm1183_vm1, %v1065_v4, %v1197_v13  ;;  %v1202_v19 = vsel %vm1177_vm3, %v1110_v35, %v1201_v42 }
 0x138   :  { %1461 = vmatprep.mubr.msk.f32.mxu1 %vm849_vm8, %v1198_v36  ;;  %v1203_v44 = vsel %vm1179_vm9, %v1119_v37, %v1202_v19 }
 0x139   :  { %v1135_v38 = vadd.f32 %v1134_v34, %v1133_v29  ;;  %v1128_v40 = vadd.f32 %v1127_v33, %v1126_v27 }
 0x13b   :  { %v1136_v41 = vrot.slane %v1135_v38, 1  ;;  %v1204_v45 = vsel %vm1181_vm4, %v1128_v40, %v1203_v44 }
 0x13d   :  { %v1137_v43 = vadd.f32 %v1136_v41, %v1135_v38 }
 0x13f   :  { %v1205_v48 = vsel %vm1183_vm1, %v1137_v43, %v1204_v45 }
 0x140   :  { %1462 = vmatmul.mubr.msk.f32.gmra.mrb[6].mxu1 %vm849_vm8, %v1205_v48 }
 0x1f0   :  { %v1460_v51 = vpop.f32.mrb[4].mxu1 }
 0x1f1   :  { %v1280_v52 = vpop.f32.mrb[5].mxu1 }
 0x1fa   :  { %v1454_v53 = vpop.f32.mrb[4].mxu0 }
 0x1fb   :  { %v288_v54 = vpop.f32.mrb[5].mxu0 }
 0x1fc   :  { %v1299_v55 = vadd.f32 %v1280_v52, %v288_v54  ;;  %v1455_v50 = vpop.f32.mrb[6].mxu0 }
 0x1fd   :  { %v291_v56 = vpop.f32.mrb[7].mxu0 }
 0x1fe   :  { %1303 = vst [vmem:[#allocation8] sm:$0xff] %v1299_v55  ;;  %v1300_v14 = vadd.f32 %v1460_v51, %v291_v56 }
 0x200   :  { %1304 = vst [vmem:[#allocation8 + $0x8] sm:$0xff] %v1300_v14 }
 0x213   :  { %v1463_v57 = vpop.f32.mrb[6].mxu1 }
 0x214   :  { %v1302_v58 = vadd.f32 %v1463_v57, %v1455_v50  ;;  %v1290_v59 = vpop.f32.mrb[7].mxu1 }
 0x215   :  { %v1301_v46 = vadd.f32 %v1454_v53, %v1290_v59 }
 0x216   :  { %1306 = vst [vmem:[#allocation8 + $0x18] sm:$0xff] %v1302_v58 }
 0x217   :  { %1305 = vst [vmem:[#allocation8 + $0x10] sm:$0xff] %v1301_v46 }
 0x218   :  { %1556 = shalt.err (!%p1553_p0)
}
 0x219   :  { %s1557_s6 = scalar_lea.hbm %s2076_s4, 512 }
 0x21a   :  { %p1558_p1 = scmp.ne.s32.totalorder %s2076_s4, %s1557_s6  ;;  %p1561_p2 = scmp.lt.u32.totalorder %s1557_s6, %s2076_s4 }
 0x21c   :  { %p1563_p3 = pnand %p1561_p2, %p1558_p1 }
 0x21e   :  { %1566 = shalt.err (!%p1563_p3)
}
 0x21f   :  { %1318 = dma.vmem_to_hbm [thread:$0]  %s1313_s28, 512, %s2076_s4, [#allocation4], %s1577_s1, %s1577_s1, %s1578_s13  }
 0x220   :  { %1571 = dma.done.wait [#allocation4], 512  }
 0x221   :  { %1572 = vsyncadd [#allocation4], 4294966784 }
 0x222   :  { %1322 = vsyncpa [#allocation3], 1 }
 0x223   :  { %1323 = vsyncpa [#allocation6], 1 }
 0x224   :  { %1324 = vsyncpa [#allocation4], 1 }

</bundles_post_ra>
